<compile_context>
chip_gen: v5e
topology: v5e:2x2
jax: 0.10.0
libtpu: 0.0.40
codegen_flags: <defaults>
</compile_context>

<pallas_src>
import numpy as np
import jax
import jax.numpy as jnp
from jax.experimental import pallas as pl
from jax.experimental.pallas import tpu as pltpu


def _round_up(x, m):
    return ((x + m - 1) // m) * m


def _gaussian_kernel1d(kernel_size, sigma):
    # mirrors torchvision._get_gaussian_kernel1d
    ksize_half = (kernel_size - 1) * 0.5
    x = jnp.linspace(-ksize_half, ksize_half, kernel_size, dtype=jnp.float32)
    pdf = jnp.exp(-0.5 * (x / sigma) ** 2)
    return pdf / jnp.sum(pdf)


def _reflect_index(q, n):
    # torch / numpy "reflect" (no edge repeat)
    q = np.where(q < 0, -q, q)
    q = np.where(q >= n, 2 * n - 2 - q, q)
    return q


def _reflect_conv_matrix(n, kernel1d):
    """(n, n) matrix M with M[j', j] = sum_t w[t] * [reflect(j + t - pad) == j'],
    so `x @ M` applies the 1-D Gaussian with reflect padding along the last axis.
    Built from static one-hot basis matrices so the traced sigma only enters via
    a tiny tensordot."""
    k = int(kernel1d.shape[0])
    pad = k // 2
    j = np.arange(n)
    basis = np.zeros((k, n, n), np.float32)
    for t in range(k):
        q = _reflect_index(j + t - pad, n)
        basis[t, q, j] = 1.0
    return jnp.tensordot(kernel1d.astype(jnp.float32), jnp.asarray(basis), axes=1)


def _make_blur_kernel(k, H, W, Bc, pad, padL, out_dtype):
    is_int = jnp.issubdtype(out_dtype, jnp.integer)
    info = jnp.iinfo(out_dtype) if is_int else None

    def kernel(w_ref, mw_ref, x_ref, o_ref, s_ref):
        # x_ref: (Bc, H, W) native dtype   o_ref: (Bc, H, W) native dtype
        # mw_ref: (W, W) f32 reflect-conv matrix   w_ref: (k,) f32 in SMEM
        # s_ref: (Bc, padL + H + pad, W) f32 scratch (H-padded intermediate)

        # --- horizontal pass (lane axis) on the MXU -------------------------
        # Reflect padding along W is baked into mw, so this is one dense matmul.
        # The (Bc, H, W) -> (Bc*H, W) reshape is layout-trivial: the chooser
        # guarantees H % 8 == 0 or Bc == 1.
        x = x_ref[...].astype(jnp.float32)                          # (Bc, H, W)
        tmp = jnp.dot(x.reshape(Bc * H, W), mw_ref[...],
                      preferred_element_type=jnp.float32).reshape(Bc, H, W)

        # --- reflect halo along H into the padded scratch -------------------
        # Center store starts at a sublane-aligned row (padL % 8 == 0) -> unmasked vst.
        s_ref[:, padL:padL + H, :] = tmp
        for m in range(pad):        # 2*pad tiny single-row copies (reflect halo)
            s_ref[:, padL - 1 - m:padL - m, :] = tmp[:, 1 + m:2 + m, :]
            s_ref[:, padL + H + m:padL + H + m + 1, :] = tmp[:, H - 2 - m:H - 1 - m, :]

        # --- vertical pass (sublane axis) on the VPU ------------------------
        w = [w_ref[t] for t in range(k)]            # hoist the k SMEM scalars
        base = padL - pad
        acc = w[0] * s_ref[:, base:base + H, :]
        for t in range(1, k):
            acc = acc + w[t] * s_ref[:, base + t:base + t + H, :]

        # --- cast back to the input dtype in-kernel --------------------------
        # (round + clip for integer dtypes, matching torchvision's cast-back)
        if is_int:
            acc = jnp.clip(jnp.round(acc), info.min, info.max)
        o_ref[...] = acc.astype(o_ref.dtype)

    return kernel


def _vmem_budget_bytes():
    """Generation-aware VMEM limit and per-step working-set budget."""
    phys = 64 * 1024 * 1024                       # conservative fallback (v7x-sized)
    try:
        info = pltpu.get_tpu_info()
        phys = int(getattr(info, "vmem_capacity_bytes", phys))
    except Exception:
        pass
    limit = min((phys * 3) // 4, 100 * 1024 * 1024)  # ~96 MiB v5e/v6e, 48 MiB v7x
    budget = (limit * 7) // 10                       # headroom for compiler scratch
    return limit, budget


def _choose_channel_block(NC, H, W, Hs, itemsize, budget_bytes):
    """Largest divisor of N*C whose per-step working set fits the budget, with
    >= 2 grid steps whenever N*C >= 2 (keeps both v7x TensorCores busy)."""
    def need(bc):
        blk = bc * H * W
        return (2 * blk * itemsize            # double-buffered input block
                + 2 * blk * itemsize          # double-buffered output block
                + bc * Hs * W * 4             # f32 H-padded scratch
                + 3 * blk * 4                 # f32 intermediates (x, tmp, acc)
                + 2 * W * W * 4)              # (W, W) reflect-conv matrix

    min_steps = 2 if NC >= 2 else 1
    divisors = sorted((d for d in range(1, NC + 1) if NC % d == 0), reverse=True)
    for bc in divisors:
        if NC // bc < min_steps:
            continue
        if H % 8 != 0 and bc != 1:
            continue   # keep the in-kernel (Bc,H,W)->(Bc*H,W) reshape layout-trivial
        if need(bc) <= budget_bytes:
            return bc
    # TODO(synk): H-tiling with a pad-row halo (overlapping blocks) for images where
    #             even a single channel exceeds the VMEM budget.
    raise ValueError(
        f"GaussianBlur: single-channel working set ({need(1)} bytes) exceeds the "
        f"VMEM budget ({budget_bytes} bytes); H-tiling with halo is not implemented.")


def gaussian_blur_pallas(image, kernel1d):
    """Depthwise separable Gaussian blur of `image` (N, C, H, W) with reflect
    padding (torchvision TF.gaussian_blur semantics). `kernel1d` is the (k,)
    1-D Gaussian; the 2-D kernel is its outer product."""
    N, C, H, W = image.shape
    k = int(kernel1d.shape[0])
    assert k % 2 == 1, "kernel_size must be odd"
    pad = k // 2
    assert pad < H and pad < W, "reflect padding requires kernel_size//2 < H, W"

    NC = N * C
    in_dtype = image.dtype
    itemsize = jnp.dtype(in_dtype).itemsize
    padL = _round_up(pad, 8)           # sublane-aligned left pad for the H scratch
    Hs = padL + H + pad

    vmem_limit, budget = _vmem_budget_bytes()
    Bc = _choose_channel_block(NC, H, W, Hs, itemsize, budget)

    # Native layout: (NC, H, W).  W is on the 128-lane axis, H on sublanes, and the
    # channel axis is the (tiled) grid axis -- no HBM transposes in the wrapper.
    # NOTE: for tiny images (W < 128, as in the self-test) the lane axis is
    # underfilled; batch more images per call if that path matters.
    x = image.reshape(NC, H, W)                       # free reshape
    mw = _reflect_conv_matrix(W, kernel1d)            # (W, W), reflect pad baked in

    out = pl.pallas_call(
        _make_blur_kernel(k, H, W, Bc, pad, padL, in_dtype),
        out_shape=jax.ShapeDtypeStruct((NC, H, W), in_dtype),
        grid=(NC // Bc,),
        in_specs=[
            pl.BlockSpec(memory_space=pltpu.MemorySpace.SMEM),   # (k,) 1-D weights
            pl.BlockSpec((W, W), lambda i: (0, 0)),              # reflect-conv matrix
            pl.BlockSpec((Bc, H, W), lambda i: (i, 0, 0)),       # Bc channels / step
        ],
        out_specs=pl.BlockSpec((Bc, H, W), lambda i: (i, 0, 0)),
        scratch_shapes=[pltpu.VMEM((Bc, Hs, W), jnp.float32)],
        compiler_params=pltpu.CompilerParams(
            dimension_semantics=("parallel",),
            vmem_limit_bytes=int(vmem_limit),
        ),
    )(kernel1d.astype(jnp.float32), mw, x)

    return out.reshape(N, C, H, W)


class GaussianBlur:
    """JAX/Pallas port of lmcontrol GaussianBlur (random-sigma Gaussian blur)."""

    def __init__(self, kernel_size, sigma=(0.1, 2.0)):
        self.kernel_size = kernel_size
        self.sigma_min = sigma[0]
        self.sigma_max = sigma[1]

    def __call__(self, image, mask=None, *, key):
        # torch.empty(1).uniform_(min, max).item(): one random sigma per call.
        # Kept on device (no float()/host sync) so the whole op can be jitted.
        sigma = jax.random.uniform(
            key, (), minval=self.sigma_min, maxval=self.sigma_max)
        k1d = _gaussian_kernel1d(self.kernel_size, sigma)   # separable weights
        ret = gaussian_blur_pallas(image, k1d)
        if mask is None:
            return ret
        return (ret, mask)


def _reference_blur(image, kernel2d):
    # plain-JAX reference: depthwise 2-D conv with reflect padding
    N, C, H, W = image.shape
    k = int(kernel2d.shape[0])
    pad = k // 2
    x = image.astype(jnp.float32)
    xp = jnp.pad(x, ((0, 0), (0, 0), (pad, pad), (pad, pad)), mode="reflect")
    acc = jnp.zeros((N, C, H, W), jnp.float32)
    for dy in range(k):
        for dx in range(k):
            acc = acc + kernel2d[dy, dx] * xp[:, :, dy:dy + H, dx:dx + W]
    return acc.astype(image.dtype)


if __name__ == "__main__":
    key = jax.random.PRNGKey(0)
    k_img, k_sigma = jax.random.split(key)

    N, C, H, W = 2, 4, 16, 16
    image = jax.random.uniform(k_img, (N, C, H, W), dtype=jnp.float32)

    blur = GaussianBlur(kernel_size=5, sigma=(0.1, 2.0))
    out = blur(image, key=k_sigma)
    out = jax.block_until_ready(out)
    assert out.shape == (N, C, H, W)

    # sanity check vs pure-JAX reference (same sigma)
    sigma = jax.random.uniform(k_sigma, (), minval=0.1, maxval=2.0)
    k1d = _gaussian_kernel1d(5, sigma)
    ref = _reference_blur(image, jnp.outer(k1d, k1d))
    err = float(jnp.max(jnp.abs(out.astype(jnp.float32) - ref.astype(jnp.float32))))
    # Tolerance covers the MXU f32 matmul path of the horizontal pass; a genuine
    # indexing / reflect-padding bug would show up as an O(0.1) error.
    assert err < 1e-2, f"max abs err {err}"

    print("KERNEL_OK")
</pallas_src>

<mosaic_0001>
module attributes {stable_mosaic.version = 11 : i64} {
  func.func @kernel(%arg0: i32, %arg1: memref<5xf32, #tpu.memory_space<smem>>, %arg2: memref<16x16xf32, #tpu.memory_space<vmem>>, %arg3: memref<4x16x16xf32, #tpu.memory_space<vmem>>, %arg4: memref<4x16x16xf32, #tpu.memory_space<vmem>>, %arg5: memref<4x26x16xf32, #tpu.memory_space<vmem>>) attributes {dimension_semantics = [#tpu.dimension_semantics<parallel>], iteration_bounds = array<i64: 2>, scalar_prefetch = 0 : i64, scratch_operands = 1 : i64, tpu.core_type = #tpu.core_type<tc>, window_params = [{transform_indices = @transform_0, window_bounds = array<i64: 5>}, {pipeline_mode = #tpu.pipeline_mode<synchronous>, transform_indices = @transform_1, window_bounds = array<i64: 16, 16>}, {transform_indices = @transform_2, window_bounds = array<i64: 4, 16, 16>}, {transform_indices = @transform_3, window_bounds = array<i64: 4, 16, 16>}]} {
    %c0 = arith.constant 0 : index
    %c0_0 = arith.constant 0 : index
    %c0_1 = arith.constant 0 : index
    %0 = vector.load %arg3[%c0, %c0_0, %c0_1] : memref<4x16x16xf32, #tpu.memory_space<vmem>>, vector<4x16x16xf32>
    %1 = vector.shape_cast %0 : vector<4x16x16xf32> to vector<64x16xf32>
    %c0_2 = arith.constant 0 : index
    %c0_3 = arith.constant 0 : index
    %2 = vector.load %arg2[%c0_2, %c0_3] : memref<16x16xf32, #tpu.memory_space<vmem>>, vector<16x16xf32>
    %cst = arith.constant dense<0.000000e+00> : vector<64x16xf32>
    %3 = tpu.matmul %1, %2, %cst {dimension_numbers = #tpu.dot_dimension_numbers<[1], [0], [0], [1], [0, 0, 1, 1], [], []>} : vector<64x16xf32>, vector<16x16xf32>, vector<64x16xf32> -> vector<64x16xf32>
    %4 = vector.shape_cast %3 : vector<64x16xf32> to vector<4x16x16xf32>
    %c0_4 = arith.constant 0 : index
    %c8 = arith.constant 8 : index
    %c0_5 = arith.constant 0 : index
    %5 = vector.load %arg5[%c0_4, %c8, %c0_5] : memref<4x26x16xf32, #tpu.memory_space<vmem>>, vector<4x16x16xf32>
    tpu.vector_store %arg5[%c0_4, %c8, %c0_5], %4 {strides = array<i32>} : memref<4x26x16xf32, #tpu.memory_space<vmem>>, vector<4x16x16xf32>,
    %6 = vector.extract_strided_slice %4 {offsets = [0, 1, 0], sizes = [4, 1, 16], strides = [1, 1, 1]} : vector<4x16x16xf32> to vector<4x1x16xf32>
    %c0_6 = arith.constant 0 : index
    %c7 = arith.constant 7 : index
    %c0_7 = arith.constant 0 : index
    %7 = vector.load %arg5[%c0_6, %c7, %c0_7] : memref<4x26x16xf32, #tpu.memory_space<vmem>>, vector<4x1x16xf32>
    tpu.vector_store %arg5[%c0_6, %c7, %c0_7], %6 {strides = array<i32>} : memref<4x26x16xf32, #tpu.memory_space<vmem>>, vector<4x1x16xf32>,
    %8 = vector.extract_strided_slice %4 {offsets = [0, 14, 0], sizes = [4, 1, 16], strides = [1, 1, 1]} : vector<4x16x16xf32> to vector<4x1x16xf32>
    %c0_8 = arith.constant 0 : index
    %c24 = arith.constant 24 : index
    %c0_9 = arith.constant 0 : index
    %9 = vector.load %arg5[%c0_8, %c24, %c0_9] : memref<4x26x16xf32, #tpu.memory_space<vmem>>, vector<4x1x16xf32>
    tpu.vector_store %arg5[%c0_8, %c24, %c0_9], %8 {strides = array<i32>} : memref<4x26x16xf32, #tpu.memory_space<vmem>>, vector<4x1x16xf32>,
    %10 = vector.extract_strided_slice %4 {offsets = [0, 2, 0], sizes = [4, 1, 16], strides = [1, 1, 1]} : vector<4x16x16xf32> to vector<4x1x16xf32>
    %c0_10 = arith.constant 0 : index
    %c6 = arith.constant 6 : index
    %c0_11 = arith.constant 0 : index
    %11 = vector.load %arg5[%c0_10, %c6, %c0_11] : memref<4x26x16xf32, #tpu.memory_space<vmem>>, vector<4x1x16xf32>
    tpu.vector_store %arg5[%c0_10, %c6, %c0_11], %10 {strides = array<i32>} : memref<4x26x16xf32, #tpu.memory_space<vmem>>, vector<4x1x16xf32>,
    %12 = vector.extract_strided_slice %4 {offsets = [0, 13, 0], sizes = [4, 1, 16], strides = [1, 1, 1]} : vector<4x16x16xf32> to vector<4x1x16xf32>
    %c0_12 = arith.constant 0 : index
    %c25 = arith.constant 25 : index
    %c0_13 = arith.constant 0 : index
    %13 = vector.load %arg5[%c0_12, %c25, %c0_13] : memref<4x26x16xf32, #tpu.memory_space<vmem>>, vector<4x1x16xf32>
    tpu.vector_store %arg5[%c0_12, %c25, %c0_13], %12 {strides = array<i32>} : memref<4x26x16xf32, #tpu.memory_space<vmem>>, vector<4x1x16xf32>,
    %c0_14 = arith.constant 0 : index
    %14 = memref.load %arg1[%c0_14] : memref<5xf32, #tpu.memory_space<smem>>
    %c1 = arith.constant 1 : index
    %15 = memref.load %arg1[%c1] : memref<5xf32, #tpu.memory_space<smem>>
    %c2 = arith.constant 2 : index
    %16 = memref.load %arg1[%c2] : memref<5xf32, #tpu.memory_space<smem>>
    %c3 = arith.constant 3 : index
    %17 = memref.load %arg1[%c3] : memref<5xf32, #tpu.memory_space<smem>>
    %c4 = arith.constant 4 : index
    %18 = memref.load %arg1[%c4] : memref<5xf32, #tpu.memory_space<smem>>
    %c0_15 = arith.constant 0 : index
    %c6_16 = arith.constant 6 : index
    %c0_17 = arith.constant 0 : index
    %19 = vector.load %arg5[%c0_15, %c6_16, %c0_17] : memref<4x26x16xf32, #tpu.memory_space<vmem>>, vector<4x16x16xf32>
    %20 = vector.broadcast %14 : f32 to vector<4x16x16xf32>
    %21 = arith.mulf %20, %19 : vector<4x16x16xf32>
    %c0_18 = arith.constant 0 : index
    %c7_19 = arith.constant 7 : index
    %c0_20 = arith.constant 0 : index
    %22 = vector.load %arg5[%c0_18, %c7_19, %c0_20] : memref<4x26x16xf32, #tpu.memory_space<vmem>>, vector<4x16x16xf32>
    %23 = vector.broadcast %15 : f32 to vector<4x16x16xf32>
    %24 = arith.mulf %23, %22 : vector<4x16x16xf32>
    %25 = arith.addf %21, %24 : vector<4x16x16xf32>
    %c0_21 = arith.constant 0 : index
    %c8_22 = arith.constant 8 : index
    %c0_23 = arith.constant 0 : index
    %26 = vector.load %arg5[%c0_21, %c8_22, %c0_23] : memref<4x26x16xf32, #tpu.memory_space<vmem>>, vector<4x16x16xf32>
    %27 = vector.broadcast %16 : f32 to vector<4x16x16xf32>
    %28 = arith.mulf %27, %26 : vector<4x16x16xf32>
    %29 = arith.addf %25, %28 : vector<4x16x16xf32>
    %c0_24 = arith.constant 0 : index
    %c9 = arith.constant 9 : index
    %c0_25 = arith.constant 0 : index
    %30 = vector.load %arg5[%c0_24, %c9, %c0_25] : memref<4x26x16xf32, #tpu.memory_space<vmem>>, vector<4x16x16xf32>
    %31 = vector.broadcast %17 : f32 to vector<4x16x16xf32>
    %32 = arith.mulf %31, %30 : vector<4x16x16xf32>
    %33 = arith.addf %29, %32 : vector<4x16x16xf32>
    %c0_26 = arith.constant 0 : index
    %c10 = arith.constant 10 : index
    %c0_27 = arith.constant 0 : index
    %34 = vector.load %arg5[%c0_26, %c10, %c0_27] : memref<4x26x16xf32, #tpu.memory_space<vmem>>, vector<4x16x16xf32>
    %35 = vector.broadcast %18 : f32 to vector<4x16x16xf32>
    %36 = arith.mulf %35, %34 : vector<4x16x16xf32>
    %37 = arith.addf %33, %36 : vector<4x16x16xf32>
    %c0_28 = arith.constant 0 : index
    %c0_29 = arith.constant 0 : index
    %c0_30 = arith.constant 0 : index
    %38 = vector.load %arg4[%c0_28, %c0_29, %c0_30] : memref<4x16x16xf32, #tpu.memory_space<vmem>>, vector<4x16x16xf32>
    tpu.vector_store %arg4[%c0_28, %c0_29, %c0_30], %37 {strides = array<i32>} : memref<4x16x16xf32, #tpu.memory_space<vmem>>, vector<4x16x16xf32>,
    return
  }
  func.func @transform_0(%arg0: i32) -> i32 {
    %c0_i32 = arith.constant 0 : i32
    %c0_i32_0 = arith.constant 0 : i32
    return %c0_i32 : i32
  }
  func.func @transform_1(%arg0: i32) -> (i32, i32) {
    %c0_i32 = arith.constant 0 : i32
    %c0_i32_0 = arith.constant 0 : i32
    %c0_i32_1 = arith.constant 0 : i32
    return %c0_i32, %c0_i32_0 : i32, i32
  }
  func.func @transform_2(%arg0: i32) -> (i32, i32, i32) {
    %c0_i32 = arith.constant 0 : i32
    %c0_i32_0 = arith.constant 0 : i32
    %c0_i32_1 = arith.constant 0 : i32
    return %arg0, %c0_i32, %c0_i32_0 : i32, i32, i32
  }
  func.func @transform_3(%arg0: i32) -> (i32, i32, i32) {
    %c0_i32 = arith.constant 0 : i32
    %c0_i32_0 = arith.constant 0 : i32
    %c0_i32_1 = arith.constant 0 : i32
    return %arg0, %c0_i32, %c0_i32_0 : i32, i32, i32
  }
}

</mosaic_0001>

<bundles_post_ra>
// kernel: tpu_custom_call.1
= control target key start
LH: loop header
LB: loop body
LE: loop exit
PB: predicated region body
PF: predicated region fallthrough
CT: control target
= control target key end

     0   :  { %s1123_s0 = inlined_call_operand.hbm [shape: f32[5], index: 0, kind: input, shape index: {}]   ;;  %s1124_s1 = inlined_call_operand.hbm [shape: f32[16,16], index: 1, kind: input, shape index: {}]   ;;  %s1125_s2 = inlined_call_operand.hbm [shape: f32[8,16,16], index: 2, kind: input, shape index: {}]   ;;  %s1126_s3 = inlined_call_operand.hbm [shape: f32[8,16,16], index: 3, kind: output, shape index: {}]  }
   0x1   :  { %1127 = sst [smem:[#allocation15_spill]] %s1123_s0 }
   0x2   :  { %1128 = sst [smem:[#allocation16_spill]] %s1124_s1 }
   0x3   :  { %8 = vsyncpa [#allocation6], 0 }
   0x4   :  { %9 = vsyncpa [#allocation4], 0 }
   0x5   :  { %10 = vsyncpa [#allocation9], 0 }
   0x6   :  { %12 = vsyncpa [#allocation9 + $0x1], 0 }
   0x7   :  { %13 = vsyncpa [#allocation5], 0 }
   0x8   :  { %15 = vsyncpa [#allocation5 + $0x1], 0  ;;  %s863_s12 = smov 0   ;;  %s865_s13 = smov 0  }
   0x9   :  { %s867_s14 = smov 0   ;;  %s869_s15 = smov 0  }
   0xa LB: > { %s884_s16 = sadd.s32 4294967295, %s835_s15   ;;  %s573_s17 = sadd.s32 4294967294, %s835_s15   ;;  %s835_s15 = sphi %s869_s15, %s1141_s15   ;;  %s831_s14 = sphi %s867_s14, %s1140_s14   ;;  %s827_s13 = sphi %s865_s13, %s1139_s13   ;;  %s823_s12 = sphi %s863_s12, %s1138_s12  }
   0xb   : > { %s888_s18 = sadd.s32 1, %s835_s15   ;;  %s70_s19 = sadd.s32 1, %s831_s14 }
   0xc   : > { %s67_s20 = ssub.s32 %s835_s15, %s888_s18  ;;  %p77_p0 = scmp.ne.s32.totalorder %s831_s14, %s827_s13 }
   0xd   : > { %p68_p1 = scmp.eq.s32.totalorder %s67_s20, 0  ;;  %p78_p2 = scmp.eq.s32.totalorder %s835_s15, 0 }
   0xe   : > { %p83_p3 = scmp.ne.s32.totalorder %s827_s13, %s823_s12  ;;  %p84_p4 = scmp.eq.s32.totalorder %s884_s16, 0 }
   0xf   : > { %s900_s21 = scalar_select %p68_p1, %s831_s14, %s70_s19  }
  0x10   : > { %p902_p5 = por %p78_p2, %p77_p0  ;;  %p908_p6 = por %p84_p4, %p83_p3 }
  0x11   : > { %p107_p7 = scmp.eq.s32.totalorder %s884_s16, 1  ;;  %p113_p8 = scmp.eq.s32.totalorder %s573_s17, 1 }
  0x12   : > { %p574_p9 = scmp.ge.s32.totalorder %s835_s15, 1  ;;  %p120_p10 = scmp.lt.s32.totalorder %s835_s15, 3 }
  0x13   : > { %p915_p11 = por %p107_p7, %p77_p0  ;;  %p919_p12 = por %p113_p8, %p83_p3 }
  0x14   : > { %p923_p13 = pnand %p574_p9, %p120_p10  ;;  %s1134_s0 = sld [smem:[#allocation15_spill]] }
  0x15   : > { %p644_p2 = scmp.lt.s32.totalorder %s835_s15, 2  ;;  %s1135_s1 = sld [smem:[#allocation16_spill]] }
  0x16   : > { %p627_p1 = pneg %p923_p13  ;;  %s837_s7 = smov [#allocation3]  }
  0x17   : > { %p941_p7 = pnand %p644_p2, %p902_p5  ;;  %s838_s8 = smov [#allocation7]  }
  0x18   : > { %p628_p3 = pnand %p627_p1, %p84_p4  ;;  %s143_s9 = sshll.u32 %s838_s8, 4  ;;  %s144_s9 = int_to_ptr.vmem [resolvable:$true] %s143_s9 }
  0x19   : > { %s157_s10 = sand.u32 1, %s831_s14   ;;  %s839_s11 = smov 128  }
  0x1a   : > { %s132_s29 = sshll.u32 %s1134_s0, 4  ;;  %s840_s17 = smov 8   ;;  %s133_s29 = int_to_ptr.hbm [resolvable:$true] %s132_s29 }
  0x1b   : > { %s141_s5 = sshll.u32 %s1135_s1, 4  ;;  %s578_s19 = sshll.u32 %s157_s10, 6  ;;  %s142_s5 = int_to_ptr.hbm [resolvable:$true] %s141_s5 }
  0x1c   : > { %630 = dma.hbm_to_smem (!%p628_p3), %s133_s29, 16, %s837_s7, [#allocation6]  }
  0x1d   : > { %633 = dma.hbm_to_vmem [thread:$0]  (!%p628_p3), %s142_s5, 256, %s144_s9, [#allocation4], %s839_s11, %s839_s11, %s840_s17  }
  0x1e   : > { %s606_s20 = sshll.u32 %s835_s15, 6  ;;  %s161_s30 = scalar_lea.vmem [#allocation8], %s578_s19 }
  0x1f   : > { %s167_s22 = scalar_lea.hbm %s1125_s2, %s606_s20  ;;  %s170_s4 = sshll.u32 %s161_s30, 4  ;;  %s171_s4 = int_to_ptr.vmem [resolvable:$true] %s170_s4 }
  0x20   : > { %s168_s0 = sshll.u32 %s167_s22, 4  ;;  %s158_s29 = scalar_lea.sflag [#allocation9], %s157_s10  ;;  %s169_s0 = int_to_ptr.hbm [resolvable:$true] %s168_s0 }
  0x21   : > { %s731_s7 = sshra.s32 %s169_s0, 4  ;;  %p735_p8 = pneg %p941_p7  ;;  %s732_s7 = int_to_ptr.hbm [resolvable:$true] %s731_s7 }
  0x22   : > { %s733_s8 = scalar_lea.hbm %s732_s7, 64  ;;  %s738_s1 = scalar_lea.hbm %s1125_s2, 128 }
  0x23   : > { %p734_p5 = scmp.ne.s32.totalorder %s732_s7, %s733_s8  ;;  %p739_p1 = scmp.lt.s32.totalorder %s732_s7, %s1125_s2 }
  0x24   : > { %p740_p2 = scmp.lt.s32.totalorder %s738_s1, %s733_s8 }
  0x25   : > { %p736_p9 = pnand %p735_p8, %p734_p5 }
  0x26   : > { %p741_p3 = por %p740_p2, %p739_p1 }
  0x27   : > { %p737_p10 = pneg %p736_p9 }
  0x29   : > { %p742_p0 = pnand %p741_p3, %p737_p10 }
  0x2b   : > { %745 = shalt.err (!%p742_p0)
}
  0x2c   : > { %637 = dma.hbm_to_vmem [thread:$0]  (!%p941_p7), %s169_s0, 1024, %s171_s4, %s158_s29, %s839_s11, %s839_s11, %s840_s17  }
  0x2d   : > { %182 = sbr.rel (%p923_p13) target bundleno = 241 (0xf1), region = 32 }
  0x32   : > { %806 = dma.done.wait (%p84_p4), [#allocation6], 16  }
  0x33   : > { %808 = vsyncadd (%p84_p4), [#allocation6], 4294967280 }
  0x34   : > { %810 = dma.done.wait (%p84_p4), [#allocation4], 256  }
  0x35   : > { %812 = vsyncadd (%p84_p4), [#allocation4], 4294967040  ;;  %s971_s1 = sand.u32 1, %s827_s13  }
  0x36   : > { %s585_s0 = sshll.u32 %s971_s1, 6  ;;  %s195_s26 = scalar_lea.sflag [#allocation9], %s971_s1 }
  0x37   : > { %s198_s6 = scalar_lea.vmem [#allocation8], %s585_s0 }
  0x38   : > { %814 = dma.done.wait (%p908_p6), %s195_s26, 1024  }
  0x39   : > { %816 = vsyncadd (%p908_p6), %s195_s26, 4294966272 }
  0x3a   : > { %204 = sfence }
  0x3b   : > { %v234_v0 = vld [vmem:[#allocation7 + $0x8] sm:$0xff]  ;;  %v233_v1 = vld [vmem:[#allocation7] sm:$0xff]  ;;  %v225_v2 = vld [vmem:[%s198_s6] sm:$0xff]  ;;  %vm235_vm0 = vcmask 130048   ;;  %vm309_vm1 = vcmask 123905   ;;  %vm319_vm2 = vcmask 124930  }
  0x3c   : > { %274 = vmatpush.msra.mxu0 %v234_v0  ;;  %609 = vmatpush.msra.mxu1 %v234_v0  ;;  %v227_v3 = vld [vmem:[%s198_s6 + $0x10] sm:$0xff]  ;;  %v229_v4 = vld [vmem:[%s198_s6 + $0x20] sm:$0xff]  ;;  %v226_v6 = vld [vmem:[%s198_s6 + $0x8] sm:$0xff]  ;;  %s329_s23 = sld [smem:[#allocation3]]  ;;  %vm314_vm3 = vcmask 129030   ;;  %vm324_vm4 = vcmask 128005  }
  0x3d   : > { %610 = vmatpush.msra.mxu2 %v234_v0  ;;  %611 = vmatpush.msra.mxu3 %v234_v0  ;;  %v231_v5 = vld [vmem:[%s198_s6 + $0x30] sm:$0xff]  ;;  %v228_v7 = vld [vmem:[%s198_s6 + $0x18] sm:$0xff]  ;;  %v230_v8 = vld [vmem:[%s198_s6 + $0x28] sm:$0xff]  ;;  %s595_s10 = sld [smem:[#allocation3 + $0x1]]  ;;  %s1058_s28 = scalar_lea.vmem [#allocation10], %s585_s0 }
  0x3e   : > { %275 = vmatpush.msra.mxu0 %v233_v1  ;;  %612 = vmatpush.msra.mxu1 %v233_v1  ;;  %v232_v9 = vld [vmem:[%s198_s6 + $0x38] sm:$0xff]  ;;  %s596_s11 = sld [smem:[#allocation3 + $0x2]]  ;;  %s608_s22 = sshll.u32 %s884_s16, 6 }
  0x3f   : > { %613 = vmatpush.msra.mxu2 %v233_v1  ;;  %614 = vmatpush.msra.mxu3 %v233_v1  ;;  %s1004_s17 = sld [smem:[#allocation3 + $0x3]]  ;;  %s472_s4 = scalar_lea.hbm %s1126_s3, %s608_s22 }
  0x40   : > { %587 = vmatmul.msk.f32.vlgmr.msra.gmra.mxu0 %vm235_vm0, %v225_v2  ;;  %589 = vmatmul.msk.f32.vlgmr.msra.gmra.mxu1 %vm235_vm0, %v227_v3  ;;  %s1009_s19 = sld [smem:[#allocation3 + $0x4]]  ;;  %s473_s29 = sshll.u32 %s1058_s28, 4  ;;  %s474_s29 = int_to_ptr.vmem [resolvable:$true] %s473_s29 }
  0x41   : > { %591 = vmatmul.msk.f32.vlgmr.msra.gmra.mxu2 %vm235_vm0, %v229_v4  ;;  %593 = vmatmul.msk.f32.vlgmr.msra.gmra.mxu3 %vm235_vm0, %v231_v5  ;;  %s475_s7 = sshll.u32 %s472_s4, 4  ;;  %s460_s8 = scalar_lea.sflag [#allocation5], %s971_s1  ;;  %s476_s7 = int_to_ptr.hbm [resolvable:$true] %s475_s7 }
  0x42   : > { %v997_v15 = vstv %s329_s23  ;;  %s775_s5 = sshra.s32 %s476_s7, 4  ;;  %s781_s0 = scalar_lea.hbm %s1126_s3, 128  ;;  %s776_s5 = int_to_ptr.hbm [resolvable:$true] %s775_s5 }
  0x43   : > { %v999_v17 = vstv %s595_s10  ;;  %s777_s9 = scalar_lea.hbm %s776_s5, 64  ;;  %p782_p0 = scmp.lt.s32.totalorder %s776_s5, %s1126_s3 }
  0x44   : > { %v1011_v24 = vstv %s596_s11  ;;  %p778_p4 = scmp.ne.s32.totalorder %s776_s5, %s777_s9  ;;  %p783_p7 = scmp.lt.s32.totalorder %s781_s0, %s777_s9 }
  0x45   : > { %v1027_v44 = vstv %s1004_s17 }
  0x46   : > { %v1032_v51 = vstv %s1009_s19  ;;  %p779_p6 = pnand %p778_p4, %p915_p11  ;;  %p784_p5 = por %p783_p7, %p782_p0 }
  0x48   : > { %588 = vmatmul.msk.f32.gmra.mxu0 %vm235_vm0, %v226_v6  ;;  %590 = vmatmul.msk.f32.gmra.mxu1 %vm235_vm0, %v228_v7  ;;  %p780_p13 = pneg %p779_p6 }
  0x49   : > { %592 = vmatmul.msk.f32.gmra.mxu2 %vm235_vm0, %v230_v8  ;;  %594 = vmatmul.msk.f32.gmra.mxu3 %vm235_vm0, %v232_v9 }
  0x4a   : > { %p785_p8 = pnand %p784_p5, %p780_p13 }
  0xbd   : > { %v277_v10 = vpop.f32.mrf.mxu0  ;;  %v283_v11 = vpop.f32.mrf.mxu1 }
  0xbe   : > { %301 = vst.msk [vmem:[#allocation2 + $0x8] sm:$0xff] %vm235_vm0, %v277_v10 }
  0xbf   : > { %310 = vst.msk [vmem:[#allocation2 + $0x6] sm:$0x2] %vm309_vm1, %v277_v10 }
  0xc0   : > { %320 = vst.msk [vmem:[#allocation2 + $0x4] sm:$0x4] %vm319_vm2, %v277_v10 }
  0xc1   : > { %303 = vst.msk [vmem:[#allocation2 + $0x28] sm:$0xff] %vm235_vm0, %v283_v11 }
  0xc2   : > { %311 = vst.msk [vmem:[#allocation2 + $0x26] sm:$0x2] %vm309_vm1, %v283_v11 }
  0xc3   : > { %321 = vst.msk [vmem:[#allocation2 + $0x24] sm:$0x4] %vm319_vm2, %v283_v11 }
  0xc4   : > { %v289_v12 = vpop.f32.mrf.mxu2  ;;  %v295_v13 = vpop.f32.mrf.mxu3 }
  0xc5   : > { %305 = vst.msk [vmem:[#allocation2 + $0x48] sm:$0xff] %vm235_vm0, %v289_v12  ;;  %v280_v18 = vpop.f32.mrf.mxu0  ;;  %v376_v23 = vld [vmem:[#allocation2 + $0x8] sm:$0xff]  ;;  %v286_v25 = vpop.f32.mrf.mxu1 }
  0xc6   : > { %312 = vst.msk [vmem:[#allocation2 + $0x46] sm:$0x2] %vm309_vm1, %v289_v12  ;;  %v351_v16 = vld [vmem:[#allocation2 + $0x7] sm:$0xff]  ;;  %v385_v31 = vmul.f32 %v1011_v24, %v376_v23 }
  0xc7   : > { %v334_v14 = vld [vmem:[#allocation2 + $0x6] sm:$0xff]  ;;  %322 = vst.msk [vmem:[#allocation2 + $0x44] sm:$0x4] %vm319_vm2, %v289_v12  ;;  %v360_v21 = vmul.f32 %v999_v17, %v351_v16 }
  0xc8   : > { %307 = vst.msk [vmem:[#allocation2 + $0x68] sm:$0xff] %vm235_vm0, %v295_v13  ;;  %v343_v20 = vmul.f32 %v997_v15, %v334_v14  ;;  %v378_v28 = vld [vmem:[#allocation2 + $0x28] sm:$0xff] }
  0xc9   : > { %v353_v19 = vld [vmem:[#allocation2 + $0x27] sm:$0xff]  ;;  %313 = vst.msk [vmem:[#allocation2 + $0x66] sm:$0x2] %vm309_vm1, %v295_v13  ;;  %v387_v37 = vmul.f32 %v1011_v24, %v378_v28 }
  0xca   : > { %v336_v22 = vld [vmem:[#allocation2 + $0x26] sm:$0xff]  ;;  %323 = vst.msk [vmem:[#allocation2 + $0x64] sm:$0x4] %vm319_vm2, %v295_v13  ;;  %v362_v27 = vmul.f32 %v999_v17, %v353_v19  ;;  %v368_v30 = vadd.f32 %v360_v21, %v343_v20 }
  0xcb   : > { %302 = vst.msk [vmem:[#allocation2 + $0x10] sm:$0xff] %vm235_vm0, %v280_v18  ;;  %v345_v26 = vmul.f32 %v997_v15, %v336_v22 }
  0xcc   : > { %315 = vst.msk [vmem:[#allocation2 + $0x12] sm:$0x40] %vm314_vm3, %v280_v18  ;;  %v292_v34 = vpop.f32.mrf.mxu2  ;;  %v380_v38 = vld [vmem:[#allocation2 + $0x48] sm:$0xff]  ;;  %v298_v45 = vpop.f32.mrf.mxu3  ;;  %v393_v46 = vadd.f32 %v385_v31, %v368_v30 }
  0xcd   : > { %v355_v29 = vld [vmem:[#allocation2 + $0x47] sm:$0xff]  ;;  %325 = vst.msk [vmem:[#allocation2 + $0x14] sm:$0x20] %vm324_vm4, %v280_v18  ;;  %v370_v36 = vadd.f32 %v362_v27, %v345_v26  ;;  %v389_v52 = vmul.f32 %v1011_v24, %v380_v38 }
  0xce   : > { %v338_v32 = vld [vmem:[#allocation2 + $0x46] sm:$0xff]  ;;  %v364_v33 = vmul.f32 %v999_v17, %v355_v29  ;;  %304 = vst.msk [vmem:[#allocation2 + $0x30] sm:$0xff] %vm235_vm0, %v286_v25 }
  0xcf   : > { %v347_v35 = vmul.f32 %v997_v15, %v338_v32  ;;  %316 = vst.msk [vmem:[#allocation2 + $0x32] sm:$0x40] %vm314_vm3, %v286_v25  ;;  %v382_v43 = vld [vmem:[#allocation2 + $0x68] sm:$0xff]  ;;  %v395_v59 = vadd.f32 %v387_v37, %v370_v36 }
  0xd0   : > { %v357_v39 = vld [vmem:[#allocation2 + $0x67] sm:$0xff]  ;;  %326 = vst.msk [vmem:[#allocation2 + $0x34] sm:$0x20] %vm324_vm4, %v286_v25  ;;  %v391_v60 = vmul.f32 %v1011_v24, %v382_v43 }
  0xd1   : > { %v372_v40 = vadd.f32 %v364_v33, %v347_v35  ;;  %v340_v41 = vld [vmem:[#allocation2 + $0x66] sm:$0xff]  ;;  %v366_v42 = vmul.f32 %v999_v17, %v357_v39  ;;  %306 = vst.msk [vmem:[#allocation2 + $0x50] sm:$0xff] %vm235_vm0, %v292_v34 }
  0xd2   : > { %v349_v47 = vmul.f32 %v997_v15, %v340_v41  ;;  %v335_v48 = vld [vmem:[#allocation2 + $0xe] sm:$0xff]  ;;  %317 = vst.msk [vmem:[#allocation2 + $0x52] sm:$0x40] %vm314_vm3, %v292_v34 }
  0xd3   : > { %v352_v49 = vld [vmem:[#allocation2 + $0xf] sm:$0xff]  ;;  %v344_v53 = vmul.f32 %v997_v15, %v335_v48  ;;  %327 = vst.msk [vmem:[#allocation2 + $0x54] sm:$0x20] %vm324_vm4, %v292_v34  ;;  %v397_v63 = vadd.f32 %v389_v52, %v372_v40 }
  0xd4   : > { %v377_v50 = vld [vmem:[#allocation2 + $0x10] sm:$0xff]  ;;  %v361_v54 = vmul.f32 %v999_v17, %v352_v49  ;;  %308 = vst.msk [vmem:[#allocation2 + $0x70] sm:$0xff] %vm235_vm0, %v298_v45  ;;  %v374_v0 = vadd.f32 %v366_v42, %v349_v47 }
  0xd5   : > { %v386_v55 = vmul.f32 %v1011_v24, %v377_v50  ;;  %v401_v56 = vld [vmem:[#allocation2 + $0x9] sm:$0xff]  ;;  %v402_v57 = vld [vmem:[#allocation2 + $0x11] sm:$0xff]  ;;  %318 = vst.msk [vmem:[#allocation2 + $0x72] sm:$0x40] %vm314_vm3, %v298_v45 }
  0xd6   : > { %v426_v58 = vld [vmem:[#allocation2 + $0xa] sm:$0xff]  ;;  %v410_v61 = vmul.f32 %v1027_v44, %v401_v56  ;;  %v427_v62 = vld [vmem:[#allocation2 + $0x12] sm:$0xff]  ;;  %v369_v1 = vadd.f32 %v361_v54, %v344_v53  ;;  %v411_v2 = vmul.f32 %v1027_v44, %v402_v57  ;;  %328 = vst.msk [vmem:[#allocation2 + $0x74] sm:$0x20] %vm324_vm4, %v298_v45  ;;  %v399_v34 = vadd.f32 %v391_v60, %v374_v0 }
  0xd7   : > { %v337_v3 = vld [vmem:[#allocation2 + $0x2e] sm:$0xff]  ;;  %v435_v7 = vmul.f32 %v1032_v51, %v426_v58  ;;  %v436_v14 = vmul.f32 %v1032_v51, %v427_v62 }
  0xd8   : > { %v354_v4 = vld [vmem:[#allocation2 + $0x2f] sm:$0xff]  ;;  %v418_v6 = vadd.f32 %v410_v61, %v393_v46  ;;  %v346_v8 = vmul.f32 %v997_v15, %v337_v3  ;;  %v394_v13 = vadd.f32 %v386_v55, %v369_v1 }
  0xd9   : > { %v379_v5 = vld [vmem:[#allocation2 + $0x30] sm:$0xff]  ;;  %v363_v9 = vmul.f32 %v999_v17, %v354_v4 }
  0xda   : > { %v403_v10 = vld [vmem:[#allocation2 + $0x29] sm:$0xff]  ;;  %v404_v11 = vld [vmem:[#allocation2 + $0x31] sm:$0xff]  ;;  %v388_v16 = vmul.f32 %v1011_v24, %v379_v5  ;;  %v443_v20 = vadd.f32 %v435_v7, %v418_v6  ;;  %v419_v28 = vadd.f32 %v411_v2, %v394_v13 }
  0xdb   : > { %v428_v12 = vld [vmem:[#allocation2 + $0x2a] sm:$0xff]  ;;  %v412_v18 = vmul.f32 %v1027_v44, %v403_v10  ;;  %v429_v19 = vld [vmem:[#allocation2 + $0x32] sm:$0xff]  ;;  %v371_v21 = vadd.f32 %v363_v9, %v346_v8  ;;  %v413_v22 = vmul.f32 %v1027_v44, %v404_v11 }
  0xdc   : > { %v437_v23 = vmul.f32 %v1032_v51, %v428_v12  ;;  %v339_v25 = vld [vmem:[#allocation2 + $0x4e] sm:$0xff]  ;;  %451 = vst.msk [vmem:[%s1058_s28] sm:$0xff] %vm235_vm0, %v443_v20  ;;  %v438_v36 = vmul.f32 %v1032_v51, %v429_v19  ;;  %v444_v40 = vadd.f32 %v436_v14, %v419_v28 }
  0xdd   : > { %v356_v26 = vld [vmem:[#allocation2 + $0x4f] sm:$0xff]  ;;  %v420_v29 = vadd.f32 %v412_v18, %v395_v59  ;;  %v348_v30 = vmul.f32 %v997_v15, %v339_v25  ;;  %v396_v35 = vadd.f32 %v388_v16, %v371_v21 }
  0xde   : > { %v381_v27 = vld [vmem:[#allocation2 + $0x50] sm:$0xff]  ;;  %v365_v31 = vmul.f32 %v999_v17, %v356_v26  ;;  %452 = vst.msk [vmem:[%s1058_s28 + $0x8] sm:$0xff] %vm235_vm0, %v444_v40 }
  0xdf   : > { %v405_v32 = vld [vmem:[#allocation2 + $0x49] sm:$0xff]  ;;  %v406_v37 = vld [vmem:[#allocation2 + $0x51] sm:$0xff]  ;;  %v445_v41 = vadd.f32 %v437_v23, %v420_v29  ;;  %v390_v43 = vmul.f32 %v1011_v24, %v381_v27  ;;  %v421_v48 = vadd.f32 %v413_v22, %v396_v35 }
  0xe0   : > { %v430_v33 = vld [vmem:[#allocation2 + $0x4a] sm:$0xff]  ;;  %v414_v38 = vmul.f32 %v1027_v44, %v405_v32  ;;  %v431_v39 = vld [vmem:[#allocation2 + $0x52] sm:$0xff]  ;;  %v373_v42 = vadd.f32 %v365_v31, %v348_v30  ;;  %v415_v56 = vmul.f32 %v1027_v44, %v406_v37 }
  0xe1   : > { %v341_v45 = vld [vmem:[#allocation2 + $0x6e] sm:$0xff]  ;;  %v439_v50 = vmul.f32 %v1032_v51, %v430_v33  ;;  %v446_v59 = vadd.f32 %v438_v36, %v421_v48  ;;  %453 = vst.msk [vmem:[%s1058_s28 + $0x10] sm:$0xff] %vm235_vm0, %v445_v41  ;;  %v440_v60 = vmul.f32 %v1032_v51, %v431_v39 }
  0xe2   : > { %v358_v46 = vld [vmem:[#allocation2 + $0x6f] sm:$0xff]  ;;  %v422_v49 = vadd.f32 %v414_v38, %v397_v63  ;;  %v350_v52 = vmul.f32 %v997_v15, %v341_v45  ;;  %v398_v55 = vadd.f32 %v390_v43, %v373_v42 }
  0xe3   : > { %v383_v47 = vld [vmem:[#allocation2 + $0x70] sm:$0xff]  ;;  %v367_v57 = vmul.f32 %v999_v17, %v358_v46  ;;  %454 = vst.msk [vmem:[%s1058_s28 + $0x18] sm:$0xff] %vm235_vm0, %v446_v59 }
  0xe4   : > { %v407_v53 = vld [vmem:[#allocation2 + $0x69] sm:$0xff]  ;;  %v447_v15 = vadd.f32 %v439_v50, %v422_v49  ;;  %v392_v61 = vmul.f32 %v1011_v24, %v383_v47  ;;  %v408_v62 = vld [vmem:[#allocation2 + $0x71] sm:$0xff]  ;;  %v423_v63 = vadd.f32 %v415_v56, %v398_v55 }
  0xe5   : > { %v432_v54 = vld [vmem:[#allocation2 + $0x6a] sm:$0xff]  ;;  %v416_v58 = vmul.f32 %v1027_v44, %v407_v53  ;;  %v375_v17 = vadd.f32 %v367_v57, %v350_v52  ;;  %v433_v2 = vld [vmem:[#allocation2 + $0x72] sm:$0xff]  ;;  %v417_v4 = vmul.f32 %v1027_v44, %v408_v62 }
  0xe6   : > { %v441_v1 = vmul.f32 %v1032_v51, %v432_v54  ;;  %v448_v3 = vadd.f32 %v440_v60, %v423_v63  ;;  %455 = vst.msk [vmem:[%s1058_s28 + $0x20] sm:$0xff] %vm235_vm0, %v447_v15  ;;  %v442_v7 = vmul.f32 %v1032_v51, %v433_v2 }
  0xe7   : > { %v424_v0 = vadd.f32 %v416_v58, %v399_v34  ;;  %v400_v24 = vadd.f32 %v392_v61, %v375_v17 }
  0xe8   : > { %456 = vst.msk [vmem:[%s1058_s28 + $0x28] sm:$0xff] %vm235_vm0, %v448_v3 }
  0xe9   : > { %v449_v5 = vadd.f32 %v441_v1, %v424_v0  ;;  %v425_v6 = vadd.f32 %v417_v4, %v400_v24 }
  0xeb   : > { %457 = vst.msk [vmem:[%s1058_s28 + $0x30] sm:$0xff] %vm235_vm0, %v449_v5  ;;  %v450_v8 = vadd.f32 %v442_v7, %v425_v6 }
  0xed   : > { %458 = vst.msk [vmem:[%s1058_s28 + $0x38] sm:$0xff] %vm235_vm0, %v450_v8 }
  0xee   : > { %788 = shalt.err (!%p785_p8)
}
  0xef   : > { %s841_s1 = smov 128   ;;  %s842_s23 = smov 8  }
  0xf0   : > { %625 = dma.vmem_to_hbm [thread:$0]  (%p915_p11), %s474_s29, 1024, %s476_s7, %s460_s8, %s841_s1, %s841_s1, %s842_s23  }
  0xf1 PF: > { %s490_s10 = sand.u32 1, %s823_s12   ;;  %p1137_p9 = scmp.ge.s32.totalorder %s835_s15, 2 }
  0xf2   : > { %s491_s11 = scalar_lea.sflag [#allocation5], %s490_s10 }
  0xf3   : > { %p639_p10 = pnand %p1137_p9, %p919_p12 }
  0xf5   : > { %p640_p1 = pneg %p639_p10 }
  0xf7   : > { %818 = dma.done.wait (%p640_p1), %s491_s11, 1024  }
  0xf8   : > { %820 = vsyncadd (%p640_p1), %s491_s11, 4294966272  ;;  %p18_p2 = scmp.ge.s32.totalorder %s888_s18, 4   ;;  %s1138_s12 = smov %s827_s13 }
  0xf9   : > { %s1139_s13 = smov %s831_s14  ;;  %s1140_s14 = smov %s900_s21 }
  0xfa   : > { %s1141_s15 = smov %s888_s18  ;;  %20 = sbr.rel (!%p18_p2) target bundleno = 10 (0xa), region = 87 }
  0xff   :  { %497 = vsyncpa [#allocation4], 1 }
 0x100   :  { %499 = vsyncpa [#allocation4 + $0x1], 1 }
 0x101   :  { %500 = vsyncpa [#allocation9], 1 }
 0x102   :  { %502 = vsyncpa [#allocation9 + $0x1], 1 }
 0x103   :  { %503 = vsyncpa [#allocation5], 1 }
 0x104   :  { %505 = vsyncpa [#allocation5 + $0x1], 1 }
 0x105   :  { %506 = vsyncpa [#allocation6], 1 }
 0x106   :  { %508 = vsyncpa [#allocation6 + $0x1], 1 }

</bundles_post_ra>
